<compile_context>
chip_gen: v7x
topology: tpu7x:2x2x1
jax: 0.10.0
libtpu: 0.0.40
codegen_flags: <defaults>
</compile_context>

<pallas_src>
import functools

import jax
import jax.numpy as jnp
from jax import lax
from jax.experimental import pallas as pl
from jax.experimental.pallas import tpu as pltpu


def _round_up(x, m):
    return (x + m - 1) // m * m


def _cdiv(a, b):
    return (a + b - 1) // b


# ---------------------------------------------------------------------------
# Single-call path: the whole (lane-padded) spatial extent fits in one block.
# ---------------------------------------------------------------------------
def _in_rows_kernel(coef_ref, x_ref, o_ref, *, eps, n_true, masked):
    """coef_ref: (Rb, 2) = [scale, shift]; x_ref / o_ref: (Rb, HWp)."""
    inv_n = jnp.float32(1.0 / n_true)

    # Phase 1: per-row sum (zero padding, if any, does not perturb the sum).
    row_sum = jnp.sum(x_ref[...].astype(jnp.float32), axis=-1, keepdims=True)
    mean = row_sum * inv_n

    # Phase 2: per-row sum of squared deviations; re-read x_ref so no full
    # f32 block is kept live into phase 3.
    d = x_ref[...].astype(jnp.float32) - mean
    if masked:
        cols = lax.broadcasted_iota(jnp.int32, d.shape, 1)
        d = jnp.where(cols < n_true, d, jnp.float32(0.0))
    ssd = jnp.sum(d * d, axis=-1, keepdims=True)
    # PyTorch forward: torch.var (unbiased) * (n-1)/n == biased variance.
    inv_std = lax.rsqrt(ssd * inv_n + jnp.float32(eps))

    # Phase 3: y = x * k + b, carrying only (Rb, 1) vectors between phases.
    coef = coef_ref[...].astype(jnp.float32)
    k = inv_std * coef[:, 0:1]
    b = coef[:, 1:2] - mean * k
    o_ref[...] = (x_ref[...].astype(jnp.float32) * k + b).astype(o_ref.dtype)


# ---------------------------------------------------------------------------
# Large-HW fallback: column-blocked stats pass + elementwise apply pass.
# ---------------------------------------------------------------------------
def _in_stats_kernel(x_ref, mean_ref, inv_std_ref, sum_sc, ssq_sc, *,
                     eps, n_true, cb, masked):
    j = pl.program_id(1)

    @pl.when(j == 0)
    def _():
        sum_sc[...] = jnp.zeros_like(sum_sc)
        ssq_sc[...] = jnp.zeros_like(ssq_sc)

    x = x_ref[...].astype(jnp.float32)
    if masked:
        cols = j * cb + lax.broadcasted_iota(jnp.int32, x.shape, 1)
        x = jnp.where(cols < n_true, x, jnp.float32(0.0))
    sum_sc[...] += jnp.sum(x, axis=-1, keepdims=True)
    ssq_sc[...] += jnp.sum(x * x, axis=-1, keepdims=True)

    @pl.when(j == pl.num_programs(1) - 1)
    def _():
        inv_n = jnp.float32(1.0 / n_true)
        mean = sum_sc[...] * inv_n
        var = jnp.maximum(ssq_sc[...] * inv_n - mean * mean, jnp.float32(0.0))
        mean_ref[...] = mean
        inv_std_ref[...] = lax.rsqrt(var + jnp.float32(eps))


def _in_apply_kernel(coef_ref, x_ref, o_ref):
    coef = coef_ref[...]
    k = coef[:, 0:1]
    b = coef[:, 1:2]
    o_ref[...] = (x_ref[...].astype(jnp.float32) * k + b).astype(o_ref.dtype)


# ---------------------------------------------------------------------------
# Wrapper
# ---------------------------------------------------------------------------
def instance_normalization(x, scale, shift, *, eps=1e-9,
                           block_bytes=6 << 20,
                           vmem_limit_bytes=48 << 20):
    """Pallas TPU instance norm.  x: (N, C, H, W); scale, shift: (C,).

    Defaults are safe on v7x (64 MiB VMEM); on v5e/v6e (128 MiB) block_bytes
    can be raised to 8-16 MiB and vmem_limit_bytes to 64-96 MiB.
    """
    N, C, H, W = x.shape
    HW = H * W
    R = N * C
    dtype = x.dtype
    itemsize = jnp.dtype(dtype).itemsize  # true itemsize (no f32 inflation)

    # Lane-dense layout: rows = (n, c) instances, cols = flattened spatial.
    x2 = x.reshape(R, HW)
    scale_rows = jnp.tile(scale, N).astype(jnp.float32).reshape(R, 1)
    shift_rows = jnp.tile(shift, N).astype(jnp.float32).reshape(R, 1)

    HWp = _round_up(HW, 128)  # lane-dense spatial extent

    if 8 * HWp * itemsize <= block_bytes:
        # ---------------- single-call, row-blocked path ----------------
        masked = HWp != HW
        x2p = jnp.pad(x2, ((0, 0), (0, HWp - HW))) if masked else x2
        coef = jnp.concatenate([scale_rows, shift_rows], axis=1)  # (R, 2)

        max_rb = (block_bytes // (HWp * itemsize)) // 8 * 8
        rb_cap = _round_up(_cdiv(R, 2), 8)  # keep >=2 grid steps when possible
        Rb = int(max(8, min(max_rb, rb_cap, _round_up(R, 8))))
        grid = (_cdiv(R, Rb),)

        kernel = functools.partial(_in_rows_kernel, eps=eps, n_true=HW,
                                   masked=masked)
        cost = pl.CostEstimate(
            flops=8 * R * HW,
            transcendentals=R,
            bytes_accessed=2 * R * HWp * itemsize,
        )
        out2 = pl.pallas_call(
            kernel,
            out_shape=jax.ShapeDtypeStruct((R, HWp), dtype),
            grid=grid,
            in_specs=[
                pl.BlockSpec((Rb, 2), lambda i: (i, 0)),     # [scale, shift]
                pl.BlockSpec((Rb, HWp), lambda i: (i, 0)),   # data rows
            ],
            out_specs=pl.BlockSpec((Rb, HWp), lambda i: (i, 0)),
            compiler_params=pltpu.CompilerParams(
                dimension_semantics=("parallel",),
                vmem_limit_bytes=vmem_limit_bytes,
            ),
            cost_estimate=cost,
        )(coef, x2p)
        if masked:
            out2 = out2[:, :HW]
        return out2.reshape(N, C, H, W)

    # ---------------- large-HW fallback: column-blocked 2-D grid ------------
    Cb = max(128, (block_bytes // (8 * itemsize)) // 128 * 128)
    Cb = int(min(Cb, HWp))
    Rb = int(max(8, min((block_bytes // (Cb * itemsize)) // 8 * 8,
                        _round_up(R, 8))))
    masked = (HW % Cb) != 0          # last column block partial -> mask it
    n_row = _cdiv(R, Rb)
    n_col = _cdiv(HW, Cb)

    stats_kernel = functools.partial(_in_stats_kernel, eps=eps, n_true=HW,
                                     cb=Cb, masked=masked)
    mean, inv_std = pl.pallas_call(
        stats_kernel,
        out_shape=(jax.ShapeDtypeStruct((R, 1), jnp.float32),
                   jax.ShapeDtypeStruct((R, 1), jnp.float32)),
        grid=(n_row, n_col),
        in_specs=[pl.BlockSpec((Rb, Cb), lambda i, j: (i, j))],
        out_specs=(pl.BlockSpec((Rb, 1), lambda i, j: (i, 0)),
                   pl.BlockSpec((Rb, 1), lambda i, j: (i, 0))),
        scratch_shapes=[pltpu.VMEM((Rb, 1), jnp.float32),
                        pltpu.VMEM((Rb, 1), jnp.float32)],
        compiler_params=pltpu.CompilerParams(
            dimension_semantics=("parallel", "arbitrary"),
            vmem_limit_bytes=vmem_limit_bytes,
        ),
        cost_estimate=pl.CostEstimate(
            flops=3 * R * HW, transcendentals=R,
            bytes_accessed=R * HW * itemsize),
    )(x2)

    # Fuse per-row affine into k, b (tiny, plain JAX).
    k = inv_std * scale_rows
    b = shift_rows - mean * k
    coef = jnp.concatenate([k, b], axis=1)  # (R, 2) f32

    out2 = pl.pallas_call(
        _in_apply_kernel,
        out_shape=jax.ShapeDtypeStruct((R, HW), dtype),
        grid=(n_row, n_col),
        in_specs=[
            pl.BlockSpec((Rb, 2), lambda i, j: (i, 0)),
            pl.BlockSpec((Rb, Cb), lambda i, j: (i, j)),
        ],
        out_specs=pl.BlockSpec((Rb, Cb), lambda i, j: (i, j)),
        compiler_params=pltpu.CompilerParams(
            dimension_semantics=("parallel", "parallel"),
            vmem_limit_bytes=vmem_limit_bytes,
        ),
        cost_estimate=pl.CostEstimate(
            flops=2 * R * HW, transcendentals=0,
            bytes_accessed=2 * R * HW * itemsize),
    )(coef, x2)
    return out2.reshape(N, C, H, W)


def instance_normalization_ref(x, scale, shift, *, eps=1e-9):
    """Pure-JAX reference matching the PyTorch forward."""
    x32 = x.astype(jnp.float32)
    mean = jnp.mean(x32, axis=(2, 3), keepdims=True)
    var = jnp.mean((x32 - mean) ** 2, axis=(2, 3), keepdims=True)  # biased
    out = (x32 - mean) / jnp.sqrt(var + eps)
    out = out * scale[None, :, None, None] + shift[None, :, None, None]
    return out.astype(x.dtype)


if __name__ == "__main__":
    key = jax.random.PRNGKey(0)
    k_x, k_scale = jax.random.split(key)

    N, C, H, W = 2, 4, 16, 16
    x = jax.random.normal(k_x, (N, C, H, W), dtype=jnp.float32)

    # Deterministic parameter init mirroring the PyTorch __init__:
    #   scale ~ U[0, 1), shift = 0
    scale = jax.random.uniform(k_scale, (C,), dtype=jnp.float32)
    shift = jnp.zeros((C,), dtype=jnp.float32)

    # Main path: lane-dense single-call kernel.
    out = jax.block_until_ready(instance_normalization(x, scale, shift, eps=1e-9))
    ref = instance_normalization_ref(x, scale, shift, eps=1e-9)
    assert out.shape == (N, C, H, W)
    assert jnp.allclose(out, ref, atol=1e-5, rtol=1e-5), "mismatch vs reference"

    # Lane-padded path (HW % 128 != 0): pad + masked variance.
    x_small = jax.random.normal(k_x, (2, 4, 6, 6), dtype=jnp.float32)
    out_s = jax.block_until_ready(instance_normalization(x_small, scale, shift))
    ref_s = instance_normalization_ref(x_small, scale, shift)
    assert jnp.allclose(out_s, ref_s, atol=1e-5, rtol=1e-5), "masked path mismatch"

    # Column-blocked large-HW fallback (forced via a tiny block budget).
    out_f = jax.block_until_ready(
        instance_normalization(x, scale, shift, block_bytes=4 << 10))
    assert jnp.allclose(out_f, ref, atol=1e-4, rtol=1e-4), "fallback path mismatch"

    print("KERNEL_OK")
</pallas_src>

<mosaic_0001>
module attributes {stable_mosaic.version = 11 : i64} {
  func.func @_in_rows_kernel(%arg0: i32, %arg1: memref<8x2xf32, #tpu.memory_space<vmem>>, %arg2: memref<8x256xf32, #tpu.memory_space<vmem>>, %arg3: memref<8x256xf32, #tpu.memory_space<vmem>>) attributes {dimension_semantics = [#tpu.dimension_semantics<parallel>], iteration_bounds = array<i64: 1>, scalar_prefetch = 0 : i64, scratch_operands = 0 : i64, tpu.core_type = #tpu.core_type<tc>, window_params = [{transform_indices = @transform_0, window_bounds = array<i64: 8, 2>}, {transform_indices = @transform_1, window_bounds = array<i64: 8, 256>}, {transform_indices = @transform_2, window_bounds = array<i64: 8, 256>}]} {
    %c0 = arith.constant 0 : index
    %c0_0 = arith.constant 0 : index
    %0 = vector.load %arg2[%c0, %c0_0] : memref<8x256xf32, #tpu.memory_space<vmem>>, vector<8x256xf32>
    %cst = arith.constant dense<0.000000e+00> : vector<8xf32>
    %1 = vector.multi_reduction <add>, %0, %cst [1] : vector<8x256xf32> to vector<8xf32>
    %2 = vector.shape_cast %1 : vector<8xf32> to vector<8x1xf32>
    %cst_1 = arith.constant 3.906250e-03 : f32
    %3 = vector.broadcast %cst_1 : f32 to vector<8x1xf32>
    %4 = arith.mulf %2, %3 : vector<8x1xf32>
    %c0_2 = arith.constant 0 : index
    %c0_3 = arith.constant 0 : index
    %5 = vector.load %arg2[%c0_2, %c0_3] : memref<8x256xf32, #tpu.memory_space<vmem>>, vector<8x256xf32>
    %6 = vector.broadcast %4 : vector<8x1xf32> to vector<8x256xf32>
    %7 = arith.subf %5, %6 : vector<8x256xf32>
    %8 = arith.mulf %7, %7 : vector<8x256xf32>
    %cst_4 = arith.constant dense<0.000000e+00> : vector<8xf32>
    %9 = vector.multi_reduction <add>, %8, %cst_4 [1] : vector<8x256xf32> to vector<8xf32>
    %10 = vector.shape_cast %9 : vector<8xf32> to vector<8x1xf32>
    %cst_5 = arith.constant 3.906250e-03 : f32
    %11 = vector.broadcast %cst_5 : f32 to vector<8x1xf32>
    %12 = arith.mulf %10, %11 : vector<8x1xf32>
    %cst_6 = arith.constant 9.99999971E-10 : f32
    %13 = vector.broadcast %cst_6 : f32 to vector<8x1xf32>
    %14 = arith.addf %12, %13 : vector<8x1xf32>
    %15 = math.rsqrt %14 : vector<8x1xf32>
    %c0_7 = arith.constant 0 : index
    %c0_8 = arith.constant 0 : index
    %16 = vector.load %arg1[%c0_7, %c0_8] : memref<8x2xf32, #tpu.memory_space<vmem>>, vector<8x2xf32>
    %17 = vector.extract_strided_slice %16 {offsets = [0, 0], sizes = [8, 1], strides = [1, 1]} : vector<8x2xf32> to vector<8x1xf32>
    %18 = arith.mulf %15, %17 : vector<8x1xf32>
    %19 = vector.extract_strided_slice %16 {offsets = [0, 1], sizes = [8, 1], strides = [1, 1]} : vector<8x2xf32> to vector<8x1xf32>
    %20 = arith.mulf %4, %18 : vector<8x1xf32>
    %21 = arith.subf %19, %20 : vector<8x1xf32>
    %c0_9 = arith.constant 0 : index
    %c0_10 = arith.constant 0 : index
    %22 = vector.load %arg2[%c0_9, %c0_10] : memref<8x256xf32, #tpu.memory_space<vmem>>, vector<8x256xf32>
    %23 = vector.broadcast %18 : vector<8x1xf32> to vector<8x256xf32>
    %24 = arith.mulf %22, %23 : vector<8x256xf32>
    %25 = vector.broadcast %21 : vector<8x1xf32> to vector<8x256xf32>
    %26 = arith.addf %24, %25 : vector<8x256xf32>
    %c0_11 = arith.constant 0 : index
    %c0_12 = arith.constant 0 : index
    %27 = vector.load %arg3[%c0_11, %c0_12] : memref<8x256xf32, #tpu.memory_space<vmem>>, vector<8x256xf32>
    tpu.vector_store %arg3[%c0_11, %c0_12], %26 {strides = array<i32>} : memref<8x256xf32, #tpu.memory_space<vmem>>, vector<8x256xf32>,
    return
  }
  func.func @transform_0(%arg0: i32) -> (i32, i32) {
    %c0_i32 = arith.constant 0 : i32
    %c0_i32_0 = arith.constant 0 : i32
    return %arg0, %c0_i32 : i32, i32
  }
  func.func @transform_1(%arg0: i32) -> (i32, i32) {
    %c0_i32 = arith.constant 0 : i32
    %c0_i32_0 = arith.constant 0 : i32
    return %arg0, %c0_i32 : i32, i32
  }
  func.func @transform_2(%arg0: i32) -> (i32, i32) {
    %c0_i32 = arith.constant 0 : i32
    %c0_i32_0 = arith.constant 0 : i32
    return %arg0, %c0_i32 : i32, i32
  }
}

</mosaic_0001>

<bundles_post_ra>
// kernel: tpu_custom_call.1
= control target key start
LH: loop header
LB: loop body
LE: loop exit
PB: predicated region body
PF: predicated region fallthrough
CT: control target
= control target key end

     0   :  { %7 = vsyncpa [#allocation3], 0  ;;  %s183_s0 = inlined_call_operand.vmem [shape: f32[8,2], index: 0, kind: input, shape index: {}]   ;;  %s184_s1 = inlined_call_operand.hbm [shape: f32[8,256], index: 1, kind: input, shape index: {}]   ;;  %s185_s2 = inlined_call_operand.hbm [shape: f32[8,256], index: 2, kind: output, shape index: {}]  }
   0x1   :  { %8 = vsyncpa [#allocation4], 0  ;;  %s136_s9 = smov [#allocation2]   ;;  %s88_s13 = scalar_lea.hbm %s184_s1, 256 }
   0x2   :  { %s17_s10 = sshll.u32 %s136_s9, 4  ;;  %p89_p0 = scmp.ne.s32.totalorder %s184_s1, %s88_s13  ;;  %s18_s10 = int_to_ptr.vmem [resolvable:$true] %s17_s10 }
   0x3   :  { %p92_p1 = scmp.lt.u32.totalorder %s88_s13, %s184_s1 }
   0x5   :  { %p94_p2 = pnand %p92_p1, %p89_p0 }
   0x7   :  { %97 = shalt.err (!%p94_p2)
}
   0x8   :  { %s98_s18 = scalar_lea.vmem %s18_s10, 256  ;;  %p103_p4 = scmp.lt.s32.totalorder %s18_s10, %s18_s10 }
   0x9   :  { %p99_p3 = scmp.ne.s32.totalorder %s18_s10, %s98_s18  ;;  %p104_p5 = scmp.lt.s32.totalorder %s98_s18, %s98_s18 }
   0xb   :  { %p105_p6 = por %p104_p5, %p103_p4 }
   0xd   :  { %p106_p7 = pnand %p105_p6, %p99_p3 }
   0xf   :  { %109 = shalt.err (!%p106_p7)
}
  0x10   :  { %20 = dma.hbm_to_vmem [thread:$0]  %s184_s1, 256, %s18_s10, [#allocation3]  }
  0x11   :  { %132 = dma.done.wait [#allocation3], 256  }
  0x12   :  { %133 = vsyncadd [#allocation3], 4294967040  ;;  %v24_v0 = vld [vmem:[#allocation2] sm:$0xff]  ;;  %v25_v1 = vld [vmem:[#allocation2 + $0x8] sm:$0xff]  ;;  %v137_v10 = vmov 0   ;;  %v138_v14 = vmov 1  }
  0x13   :  { %v26_v2 = vadd.f32 %v25_v1, %v24_v0  ;;  %84 = vset.pattern.permute.xlu1 %v137_v10  ;;  %85 = vset.pattern.permute.xlu0 %v138_v14  ;;  %v40_v15 = vld [vmem:[%s183_s0] sm:$0xff]  ;;  %s139_s22 = smov 1   ;;  %s140_s23 = smov [#allocation5]  }
  0x14   :  { %s70_s24 = sshll.u32 %s140_s23, 4  ;;  %s71_s24 = int_to_ptr.vmem [resolvable:$true] %s70_s24 }
  0x15   :  { %27 = vadd.xlane.f32.xlu0 %v26_v2  ;;  %s110_s0 = scalar_lea.vmem %s71_s24, 256  ;;  %p115_p9 = scmp.lt.s32.totalorder %s71_s24, %s71_s24 }
  0x16   :  { %p111_p8 = scmp.ne.s32.totalorder %s71_s24, %s110_s0  ;;  %p116_p10 = scmp.lt.s32.totalorder %s110_s0, %s110_s0 }
  0x18   :  { %p117_p11 = por %p116_p10, %p115_p9 }
  0x1a   :  { %p118_p12 = pnand %p117_p11, %p111_p8 }
  0xa2   :  { %v28_v3 = vpop.xlane.xlu0 %27 }
  0xa3   :  { %v29_v4 = vmul.f32 0.00390625, %v28_v3 }
  0xa5   :  { %v30_v5 = vsub.f32 %v24_v0, %v29_v4  ;;  %v31_v6 = vsub.f32 %v25_v1, %v29_v4 }
  0xa7   :  { %v32_v7 = vmul.f32 %v30_v5, %v30_v5  ;;  %v33_v8 = vmul.f32 %v31_v6, %v31_v6 }
  0xa9   :  { %v34_v9 = vadd.f32 %v33_v8, %v32_v7 }
  0xab   :  { %35 = vadd.xlane.f32.xlu0 %v34_v9 }
 0x138   :  { %v36_v11 = vpop.xlane.xlu0 %35 }
 0x139   :  { %v37_v12 = vmul.f32 0.00390625, %v36_v11 }
 0x13b   :  { %v38_v13 = vadd.f32 1e-09, %v37_v12 }
 0x13d   :  { %86 = vrsqrt.f32 %v38_v13 }
 0x147   :  { %v87_v16 = vpop.eup %86 }
 0x148   :  { %v41_v17 = vmul.f32 %v87_v16, %v40_v15 }
 0x14a   :  { %v42_v18 = vmul.f32 %v41_v17, %v29_v4 }
 0x14c   :  { %44 = vrot.lane.b32.xlu1 %v42_v18, %s139_s22 }
 0x150   :  { %50 = vperm.xlu1 %84, %v41_v17  }
 0x1be   :  { %v45_v19 = vpop.permute.xlu1 %44 }
 0x1bf   :  { %v47_v20 = vsub.f32 %v40_v15, %v45_v19 }
 0x1c1   :  { %57 = vperm.xlu0 %85, %v47_v20  }
 0x1cf   :  { %v51_v21 = vpop.permute.xlu1 %50 }
 0x1d0   :  { %v53_v22 = vmul.f32 %v51_v21, %v24_v0  ;;  %v54_v23 = vmul.f32 %v51_v21, %v25_v1 }
 0x240   :  { %v58_v24 = vpop.permute.xlu0 %57 }
 0x241   :  { %v60_v25 = vadd.f32 %v58_v24, %v53_v22  ;;  %v61_v26 = vadd.f32 %v58_v24, %v54_v23 }
 0x243   :  { %62 = vst [vmem:[#allocation5] sm:$0xff] %v60_v25  ;;  %63 = vst [vmem:[#allocation5 + $0x8] sm:$0xff] %v61_v26 }
 0x244   :  { %121 = shalt.err (!%p118_p12)
}
 0x245   :  { %s122_s27 = scalar_lea.hbm %s185_s2, 256 }
 0x246   :  { %p123_p13 = scmp.ne.s32.totalorder %s185_s2, %s122_s27  ;;  %p126_p0 = scmp.lt.u32.totalorder %s122_s27, %s185_s2 }
 0x248   :  { %p128_p1 = pnand %p126_p0, %p123_p13 }
 0x24a   :  { %131 = shalt.err (!%p128_p1)
}
 0x24b   :  { %73 = dma.vmem_to_hbm [thread:$0]  %s71_s24, 256, %s185_s2, [#allocation4]  }
 0x24c   :  { %134 = dma.done.wait [#allocation4], 256  }
 0x24d   :  { %135 = vsyncadd [#allocation4], 4294967040 }
 0x24e   :  { %77 = vsyncpa [#allocation3], 1 }
 0x24f   :  { %78 = vsyncpa [#allocation4], 1 }

</bundles_post_ra>
